<compile_context>
chip_gen: v6e
topology: v6e:2x2x1
jax: 0.10.0
libtpu: 0.0.40
codegen_flags: <defaults>
</compile_context>

<pallas_src>
import jax
import jax.numpy as jnp
from jax import lax
from jax.experimental import pallas as pl
from jax.experimental.pallas import tpu as pltpu


def _make_kernel(H, W):
    """Kernel factory closing over static spatial dims."""
    HW = H * W

    def kernel(x_ref, o_ref):
        # x: (TB, H*W) -- one flattened (H, W) plane per sublane row.
        x = x_ref[...]
        neg = jnp.asarray(jnp.finfo(x.dtype).min, dtype=x.dtype)

        # Per-lane edge masks at (1, HW); jnp.where broadcasts over sublanes.
        flat = lax.broadcasted_iota(jnp.int32, (1, HW), 1)
        if W & (W - 1) == 0:
            w = flat & (W - 1)          # W power of two -> cheap bitwise and
        else:
            w = flat % W
        mask_l = w == 0                 # left edge of each image row
        mask_r = w == (W - 1)           # right edge of each image row
        mask_u = flat < W               # top image row
        mask_d = flat >= (HW - W)       # bottom image row

        # ---- row pass: max over (h, w-1), (h, w), (h, w+1) -----------------
        # roll(+1): value at w-1; wrap / cross-row values are masked to -inf.
        x_l = jnp.where(mask_l, neg, pltpu.roll(x, shift=1, axis=1))
        # roll(HW-1) == roll(-1): value at w+1.
        x_r = jnp.where(mask_r, neg, pltpu.roll(x, shift=HW - 1, axis=1))
        rmax = jnp.maximum(jnp.maximum(x_l, x_r), x)

        # ---- column pass: max over (h-1, w), (h, w), (h+1, w) --------------
        # Each sublane row is one full plane, so a lane roll by +-W moves
        # whole image rows; the wrapped rows are masked to -inf.
        r_u = jnp.where(mask_u, neg, pltpu.roll(rmax, shift=W, axis=1))
        r_d = jnp.where(mask_d, neg, pltpu.roll(rmax, shift=HW - W, axis=1))

        # Fused ReLU: max over the 3x3 window union {0}.
        out = jnp.maximum(jnp.maximum(r_u, r_d),
                          jnp.maximum(rmax, jnp.zeros_like(rmax)))
        o_ref[...] = out.astype(o_ref.dtype)

    return kernel


def _choose_tb(nc, hw, itemsize, target_block_bytes):
    """#planes per block: ~target bytes/tile, dtype-aware sublane rounding,
    capped so large problems keep >= 4 grid steps for pipelining / 2 TCs."""
    sub = 8 * max(1, 4 // itemsize)          # 8 (f32) / 16 (bf16) / 32 (int8/fp8)
    tb = max(1, target_block_bytes // (hw * itemsize))
    tb = min(tb, (nc + 3) // 4)              # keep at least ~4 grid steps
    if tb >= nc:
        return nc                            # whole problem fits one (full-dim) block
    if tb >= sub:
        return (tb // sub) * sub             # clean sublane packing
    return min(sub, nc)
    # TODO(synk): planes whose single sub-row block exceeds the VMEM budget
    #             (huge H*W) need spatial tiling with halos; not implemented.


def pooling_block(x, *, target_block_bytes=2 << 20):
    """x: (N, C, H, W) float -> (N, C, H, W); MaxPool2d(3, 1, padding=1) + ReLU."""
    assert jnp.issubdtype(x.dtype, jnp.floating), "pooling_block: float dtypes only"
    N, C, H, W = x.shape
    NC, HW = N * C, H * W
    itemsize = jnp.dtype(x.dtype).itemsize

    # Contiguous reshape (free): planes on sublanes, flattened H*W on lanes.
    xf = x.reshape(NC, HW)

    tb = _choose_tb(NC, HW, itemsize, target_block_bytes)
    grid = (pl.cdiv(NC, tb),)

    kernel = _make_kernel(H, W)

    out = pl.pallas_call(
        kernel,
        out_shape=jax.ShapeDtypeStruct((NC, HW), x.dtype),
        grid_spec=pltpu.PrefetchScalarGridSpec(
            num_scalar_prefetch=0,
            grid=grid,
            in_specs=[pl.BlockSpec((tb, HW), lambda i: (i, 0))],
            out_specs=pl.BlockSpec((tb, HW), lambda i: (i, 0)),
        ),
        compiler_params=pltpu.CompilerParams(
            dimension_semantics=("parallel",),      # shard plane-blocks across TCs
            vmem_limit_bytes=48 * 1024 * 1024,      # > v5e scoped default, < v7x physical
        ),
        cost_estimate=pl.CostEstimate(
            flops=9 * x.size,
            transcendentals=0,
            bytes_accessed=2 * x.size * itemsize,
        ),
    )(xf)

    return out.reshape(N, C, H, W)


def _reference(x):
    """Pure-JAX reference for nn.MaxPool2d(3, stride=1, padding=1) + ReLU."""
    pooled = lax.reduce_window(
        x,
        -jnp.inf,
        lax.max,
        window_dimensions=(1, 1, 3, 3),
        window_strides=(1, 1, 1, 1),
        padding=((0, 0), (0, 0), (1, 1), (1, 1)),
    )
    return jnp.maximum(pooled, 0.0)


if __name__ == "__main__":
    key = jax.random.PRNGKey(0)
    x = jax.random.normal(key, (2, 4, 16, 16), dtype=jnp.float32)

    y = jax.block_until_ready(pooling_block(x))

    y_ref = _reference(x)
    assert y.shape == (2, 4, 16, 16)
    assert jnp.allclose(y, y_ref, atol=1e-6, rtol=1e-6), "mismatch vs reference"

    print("KERNEL_OK")
</pallas_src>

<mosaic_0001>
module attributes {stable_mosaic.version = 11 : i64} {
  func.func @kernel(%arg0: i32, %arg1: memref<8x256xf32, #tpu.memory_space<vmem>>, %arg2: memref<8x256xf32, #tpu.memory_space<vmem>>) attributes {dimension_semantics = [#tpu.dimension_semantics<parallel>], iteration_bounds = array<i64: 1>, scalar_prefetch = 0 : i64, scratch_operands = 0 : i64, tpu.core_type = #tpu.core_type<tc>, window_params = [{transform_indices = @transform_0, window_bounds = array<i64: 8, 256>}, {transform_indices = @transform_1, window_bounds = array<i64: 8, 256>}]} {
    %c0 = arith.constant 0 : index
    %c0_0 = arith.constant 0 : index
    %0 = vector.load %arg1[%c0, %c0_0] : memref<8x256xf32, #tpu.memory_space<vmem>>, vector<8x256xf32>
    %1 = tpu.iota {dimensions = array<i32: 1>} : vector<1x256xi32>
    %c15_i32 = arith.constant 15 : i32
    %2 = vector.broadcast %c15_i32 : i32 to vector<1x256xi32>
    %3 = arith.andi %1, %2 : vector<1x256xi32>
    %c0_i32 = arith.constant 0 : i32
    %4 = vector.broadcast %c0_i32 : i32 to vector<1x256xi32>
    %5 = arith.cmpi eq, %3, %4 : vector<1x256xi32>
    %c15_i32_1 = arith.constant 15 : i32
    %6 = vector.broadcast %c15_i32_1 : i32 to vector<1x256xi32>
    %7 = arith.cmpi eq, %3, %6 : vector<1x256xi32>
    %c16_i32 = arith.constant 16 : i32
    %8 = vector.broadcast %c16_i32 : i32 to vector<1x256xi32>
    %9 = arith.cmpi slt, %1, %8 : vector<1x256xi32>
    %c240_i32 = arith.constant 240 : i32
    %10 = vector.broadcast %c240_i32 : i32 to vector<1x256xi32>
    %11 = arith.cmpi sge, %1, %10 : vector<1x256xi32>
    %c1_i32 = arith.constant 1 : i32
    %12 = tpu.dynamic_rotate %0 by %c1_i32 dim 1 : vector<8x256xf32>, i32 -> vector<8x256xf32>
    %cst = arith.constant -3.40282347E+38 : f32
    %13 = vector.shape_cast %5 : vector<1x256xi1> to vector<1x256xi1>
    %14 = vector.broadcast %13 : vector<1x256xi1> to vector<8x256xi1>
    %15 = vector.broadcast %cst : f32 to vector<8x256xf32>
    %16 = arith.select %14, %15, %12 : vector<8x256xi1>, vector<8x256xf32>
    %c255_i32 = arith.constant 255 : i32
    %17 = tpu.dynamic_rotate %0 by %c255_i32 dim 1 : vector<8x256xf32>, i32 -> vector<8x256xf32>
    %cst_2 = arith.constant -3.40282347E+38 : f32
    %18 = vector.shape_cast %7 : vector<1x256xi1> to vector<1x256xi1>
    %19 = vector.broadcast %18 : vector<1x256xi1> to vector<8x256xi1>
    %20 = vector.broadcast %cst_2 : f32 to vector<8x256xf32>
    %21 = arith.select %19, %20, %17 : vector<8x256xi1>, vector<8x256xf32>
    %22 = arith.maximumf %16, %21 : vector<8x256xf32>
    %23 = arith.maximumf %22, %0 : vector<8x256xf32>
    %c16_i32_3 = arith.constant 16 : i32
    %24 = tpu.dynamic_rotate %23 by %c16_i32_3 dim 1 : vector<8x256xf32>, i32 -> vector<8x256xf32>
    %cst_4 = arith.constant -3.40282347E+38 : f32
    %25 = vector.shape_cast %9 : vector<1x256xi1> to vector<1x256xi1>
    %26 = vector.broadcast %25 : vector<1x256xi1> to vector<8x256xi1>
    %27 = vector.broadcast %cst_4 : f32 to vector<8x256xf32>
    %28 = arith.select %26, %27, %24 : vector<8x256xi1>, vector<8x256xf32>
    %c240_i32_5 = arith.constant 240 : i32
    %29 = tpu.dynamic_rotate %23 by %c240_i32_5 dim 1 : vector<8x256xf32>, i32 -> vector<8x256xf32>
    %cst_6 = arith.constant -3.40282347E+38 : f32
    %30 = vector.shape_cast %11 : vector<1x256xi1> to vector<1x256xi1>
    %31 = vector.broadcast %30 : vector<1x256xi1> to vector<8x256xi1>
    %32 = vector.broadcast %cst_6 : f32 to vector<8x256xf32>
    %33 = arith.select %31, %32, %29 : vector<8x256xi1>, vector<8x256xf32>
    %34 = arith.maximumf %28, %33 : vector<8x256xf32>
    %cst_7 = arith.constant 0.000000e+00 : f32
    %35 = vector.broadcast %cst_7 : f32 to vector<8x256xf32>
    %36 = arith.maximumf %23, %35 : vector<8x256xf32>
    %37 = arith.maximumf %34, %36 : vector<8x256xf32>
    %c0_8 = arith.constant 0 : index
    %c0_9 = arith.constant 0 : index
    %38 = vector.load %arg2[%c0_8, %c0_9] : memref<8x256xf32, #tpu.memory_space<vmem>>, vector<8x256xf32>
    tpu.vector_store %arg2[%c0_8, %c0_9], %37 {strides = array<i32>} : memref<8x256xf32, #tpu.memory_space<vmem>>, vector<8x256xf32>,
    return
  }
  func.func @transform_0(%arg0: i32) -> (i32, i32) {
    %c0_i32 = arith.constant 0 : i32
    %c0_i32_0 = arith.constant 0 : i32
    return %arg0, %c0_i32 : i32, i32
  }
  func.func @transform_1(%arg0: i32) -> (i32, i32) {
    %c0_i32 = arith.constant 0 : i32
    %c0_i32_0 = arith.constant 0 : i32
    return %arg0, %c0_i32 : i32, i32
  }
}

</mosaic_0001>

<bundles_post_ra>
// kernel: tpu_custom_call.1
= control target key start
LH: loop header
LB: loop body
LE: loop exit
PB: predicated region body
PF: predicated region fallthrough
CT: control target
= control target key end

     0   :  { %6 = vsyncpa [#allocation3], 0  ;;  %s186_s0 = inlined_call_operand.hbm [shape: f32[8,256], index: 0, kind: input, shape index: {}]   ;;  %s187_s1 = inlined_call_operand.hbm [shape: f32[8,256], index: 1, kind: output, shape index: {}]  }
   0x1   :  { %7 = vsyncpa [#allocation4], 0  ;;  %s164_s6 = smov [#allocation2]  }
   0x2   :  { %s14_s7 = sshll.u32 %s164_s6, 4  ;;  %s15_s7 = int_to_ptr.vmem [resolvable:$true] %s14_s7 }
   0x3   :  { %s128_s8 = scalar_lea.vmem %s15_s7, 256  ;;  %p133_p1 = scmp.lt.s32.totalorder %s15_s7, %s15_s7 }
   0x4   :  { %p129_p0 = scmp.ne.s32.totalorder %s15_s7, %s128_s8  ;;  %p134_p2 = scmp.lt.s32.totalorder %s128_s8, %s128_s8 }
   0x6   :  { %p135_p3 = por %p134_p2, %p133_p1 }
   0x8   :  { %p136_p4 = pnand %p135_p3, %p129_p0 }
   0xa   :  { %139 = shalt.err (!%p136_p4)
}
   0xb   :  { %17 = dma.hbm_to_vmem [thread:$0]  %s186_s0, 256, %s15_s7, [#allocation3]  }
   0xc   :  { %160 = dma.done.wait [#allocation3], 256  }
   0xd   :  { %161 = vsyncadd [#allocation3], 4294967040  ;;  %v21_v0 = vld [vmem:[#allocation2] sm:$0xff]  ;;  %s165_s11 = smov 127   ;;  %s166_s12 = smov 1   ;;  %v22_v1 = vld [vmem:[#allocation2 + $0x8] sm:$0xff]  ;;  %v23_v2 = vlaneseq }
   0xe   :  { %49 = vrot.lane.b32.xlu1 %v21_v0, %s165_s11  ;;  %36 = vrot.lane.b32.xlu0 %v21_v0, %s166_s12  ;;  %s167_s0 = smov 16   ;;  %s168_s13 = smov 112  }
   0xf   :  { %v24_v3 = vand.u32 127, %v23_v2  ;;  %s169_s14 = smov [#allocation5]  }
  0x10   :  { %s105_s15 = sshll.u32 %s169_s14, 4  ;;  %s106_s15 = int_to_ptr.vmem [resolvable:$true] %s105_s15 }
  0x11   :  { %v25_v4 = vadd.s32 128, %v24_v3  ;;  %v26_v5 = vand.u32 15, %v24_v3  ;;  %vm53_vm0 = vcmp.lt.s32.totalorder %v24_v3, 127  ;;  %vm40_vm1 = vcmp.lt.s32.totalorder %v24_v3, 1  ;;  %s140_s16 = scalar_lea.vmem %s106_s15, 256  ;;  %p145_p6 = scmp.lt.s32.totalorder %s106_s15, %s106_s15 }
  0x12   :  { %51 = vrot.lane.b32.xlu1 %v22_v1, %s165_s11  ;;  %38 = vrot.lane.b32.xlu0 %v22_v1, %s166_s12  ;;  %vm32_vm6 = vcmp.lt.s32.totalorder %v24_v3, 16  ;;  %vm82_vm7 = vcmp.lt.s32.totalorder %v24_v3, 112  ;;  %p141_p5 = scmp.ne.s32.totalorder %s106_s15, %s140_s16  ;;  %p146_p7 = scmp.lt.s32.totalorder %s140_s16, %s140_s16 }
  0x13   :  { %v27_v6 = vand.u32 15, %v25_v4  ;;  %vm30_vm2 = vcmp.eq.s32.totalorder %v26_v5, 15  ;;  %vm28_vm4 = vcmp.eq.s32.totalorder %v26_v5, 0  ;;  %vm35_vm8 = vcmp.ge.s32.totalorder %v25_v4, 240 }
  0x14   :  { %p147_p8 = por %p146_p7, %p145_p6 }
  0x15   :  { %vm31_vm3 = vcmp.eq.s32.totalorder %v27_v6, 15  ;;  %vm29_vm5 = vcmp.eq.s32.totalorder %v27_v6, 0 }
  0x16   :  { %p148_p9 = pnand %p147_p8, %p141_p5 }
  0x80   :  { %v50_v7 = vpop.permute.xlu1 %49  ;;  %v37_v8 = vpop.permute.xlu0 %36 }
  0x84   :  { %v52_v9 = vpop.permute.xlu1 %51  ;;  %v39_v10 = vpop.permute.xlu0 %38 }
  0x85   :  { %v54_v11 = vsel %vm53_vm0, %v50_v7, %v52_v9  ;;  %v55_v12 = vsel %vm53_vm0, %v52_v9, %v50_v7  ;;  %v41_v13 = vsel %vm40_vm1, %v37_v8, %v39_v10  ;;  %v42_v14 = vsel %vm40_vm1, %v39_v10, %v37_v8 }
  0x86   :  { %v60_v15 = vsel %vm30_vm2, -3.4028235e+38, %v54_v11  ;;  %v61_v16 = vsel %vm31_vm3, -3.4028235e+38, %v55_v12  ;;  %v47_v17 = vsel %vm28_vm4, -3.4028235e+38, %v42_v14 }
  0x87   :  { %v48_v18 = vsel %vm29_vm5, -3.4028235e+38, %v41_v13  ;;  %v62_v19 = vmax.f32 %v47_v17, %v60_v15 }
  0x88   :  { %v63_v20 = vmax.f32 %v48_v18, %v61_v16 }
  0x89   :  { %v64_v21 = vmax.f32 %v62_v19, %v21_v0 }
  0x8a   :  { %v65_v22 = vmax.f32 %v63_v20, %v22_v1 }
  0x8b   :  { %66 = vrot.lane.b32.xlu0 %v64_v21, %s167_s0  ;;  %v93_v32 = vmax.f32 %v64_v21, 0.0 }
  0x8c   :  { %68 = vrot.lane.b32.xlu1 %v65_v22, %s167_s0  ;;  %v94_v36 = vmax.f32 %v65_v22, 0.0 }
  0x8f   :  { %78 = vrot.lane.b32.xlu0 %v64_v21, %s168_s13 }
  0x90   :  { %80 = vrot.lane.b32.xlu1 %v65_v22, %s168_s13 }
  0xfd   :  { %v67_v23 = vpop.permute.xlu0 %66 }
  0xfe   :  { %v69_v24 = vpop.permute.xlu1 %68 }
  0xff   :  { %v71_v25 = vsel %vm32_vm6, %v69_v24, %v67_v23  ;;  %v70_v31 = vsel %vm32_vm6, %v67_v23, %v69_v24 }
 0x100   :  { %v76_v28 = vsel %vm32_vm6, -3.4028235e+38, %v71_v25 }
 0x101   :  { %v79_v26 = vpop.permute.xlu0 %78 }
 0x102   :  { %v81_v27 = vpop.permute.xlu1 %80 }
 0x103   :  { %v83_v29 = vsel %vm82_vm7, %v79_v26, %v81_v27  ;;  %v84_v30 = vsel %vm82_vm7, %v81_v27, %v79_v26 }
 0x104   :  { %v90_v33 = vsel %vm35_vm8, -3.4028235e+38, %v84_v30  ;;  %v91_v34 = vmax.f32 %v76_v28, %v83_v29 }
 0x105   :  { %v92_v35 = vmax.f32 %v70_v31, %v90_v33 }
 0x106   :  { %v95_v37 = vmax.f32 %v91_v34, %v93_v32 }
 0x107   :  { %v96_v38 = vmax.f32 %v92_v35, %v94_v36 }
 0x108   :  { %97 = vst [vmem:[#allocation5] sm:$0xff] %v95_v37 }
 0x109   :  { %98 = vst [vmem:[#allocation5 + $0x8] sm:$0xff] %v96_v38 }
 0x10a   :  { %151 = shalt.err (!%p148_p9)
}
 0x10b   :  { %108 = dma.vmem_to_hbm [thread:$0]  %s106_s15, 256, %s187_s1, [#allocation4]  }
 0x10c   :  { %162 = dma.done.wait [#allocation4], 256  }
 0x10d   :  { %163 = vsyncadd [#allocation4], 4294967040 }
 0x10e   :  { %112 = vsyncpa [#allocation3], 1 }
 0x10f   :  { %113 = vsyncpa [#allocation4], 1 }

</bundles_post_ra>
